<compile_context>
chip_gen: v6e
topology: v6e:2x2x1
jax: 0.10.0
libtpu: 0.0.40
codegen_flags: <defaults>
</compile_context>

<pallas_src>
import math

import jax
import jax.numpy as jnp
import numpy as np
from jax.experimental import pallas as pl
from jax.experimental.pallas import tpu as pltpu


# ----------------------------------------------------------------------------
# Synthetic module configuration (stands in for config.hyperparams)
# ----------------------------------------------------------------------------
INPUT_DIM = 32      # hidden size coming out of the encoder
B, T = 2, 64        # batch, sequence length  (M = B*T tokens)
SLAB_LANES = 128    # lane width of the packed weight slab (one dense VMEM block)
OUT_WIDTH = 32      # lane width of the fused logits slab (>= sum(num_classes))

HEAD_CFGS = (
    # dims = linear_layers_dim, acts = activation_fns, norms = normalisation (for layers > 0)
    dict(dims=(32,),      acts=("tanh",),        norms=(),         n_class=8),
    dict(dims=(32, 16),   acts=("tanh", "relu"), norms=("layer",), n_class=6),
    dict(dims=(32,),      acts=("relu",),        norms=(),         n_class=5),
)
NUM_CLASSES = tuple(c["n_class"] for c in HEAD_CFGS)

_LN_EPS = 1e-5  # torch.nn.LayerNorm default


def _gelu_exact(x):
    # PyTorch nn.GELU() default (erf-based).
    return 0.5 * x * (1.0 + jax.lax.erf(x * (1.0 / math.sqrt(2.0))))


_ACT = {
    "tanh": jnp.tanh,
    "relu": lambda x: jnp.maximum(x, 0.0),
    "gelu": _gelu_exact,
}


# ----------------------------------------------------------------------------
# Parameter initialization (deterministic, shapes match the nn.Module __init__)
# ----------------------------------------------------------------------------
def init_params(key, input_dim, head_cfgs):
    """Flat list of params in the exact order the PyTorch module holds them."""
    params = []
    for hi, cfg in enumerate(head_cfgs):
        in_dim = input_dim
        for li, out_dim in enumerate(cfg["dims"]):
            key, k1, k2 = jax.random.split(key, 3)
            params.append(0.05 * jax.random.normal(k1, (in_dim, out_dim), jnp.float32))  # W (in,out)
            params.append(0.05 * jax.random.normal(k2, (1, out_dim), jnp.float32))       # b
            if li > 0 and cfg["norms"][li - 1] == "layer":
                key, k3, k4 = jax.random.split(key, 3)
                params.append(1.0 + 0.1 * jax.random.normal(k3, (1, out_dim), jnp.float32))  # LN gamma
                params.append(0.1 * jax.random.normal(k4, (1, out_dim), jnp.float32))        # LN beta
            in_dim = out_dim
        key, k1, k2 = jax.random.split(key, 3)
        params.append(0.05 * jax.random.normal(k1, (in_dim, cfg["n_class"]), jnp.float32))  # out_proj W
        params.append(0.05 * jax.random.normal(k2, (1, cfg["n_class"]), jnp.float32))       # out_proj b
        if hi < len(head_cfgs) - 1:
            # projections[hi] : Linear(input_dim + n_class, input_dim), split into two blocks
            key, k1, k2, k3 = jax.random.split(key, 4)
            params.append(0.05 * jax.random.normal(k1, (input_dim, input_dim), jnp.float32))       # Wp_feat
            params.append(0.05 * jax.random.normal(k2, (cfg["n_class"], input_dim), jnp.float32))  # Wp_logit
            params.append(0.05 * jax.random.normal(k3, (1, input_dim), jnp.float32))               # bp
    return params


# ----------------------------------------------------------------------------
# Pure-JAX reference (faithful, un-fused) — correctness oracle.
# ----------------------------------------------------------------------------
def _forward_ref(feats, params, head_cfgs):
    """feats: (m, D) f32; params: flat list of f32 arrays (order of init_params)."""
    it = iter(params)
    outs = []
    n_heads = len(head_cfgs)
    for hi, cfg in enumerate(head_cfgs):
        x = feats
        for li in range(len(cfg["dims"])):
            w = next(it)
            b = next(it)
            x = jnp.dot(x, w, preferred_element_type=jnp.float32) + b
            # nn.Dropout: identity in inference mode.
            if li > 0:
                norm = cfg["norms"][li - 1]
                if norm == "layer":
                    gamma = next(it)
                    beta = next(it)
                    mu = jnp.mean(x, axis=-1, keepdims=True)
                    var = jnp.mean((x - mu) * (x - mu), axis=-1, keepdims=True)
                    x = (x - mu) * jax.lax.rsqrt(var + _LN_EPS) * gamma + beta
                # 'none' -> identity
            x = _ACT[cfg["acts"][li]](x)
        wo = next(it)
        bo = next(it)
        logits = jnp.dot(x, wo, preferred_element_type=jnp.float32) + bo
        outs.append(logits)
        if hi < n_heads - 1:
            wp_f = next(it)
            wp_l = next(it)
            bp = next(it)
            feats = (jnp.dot(feats, wp_f, preferred_element_type=jnp.float32)
                     + jnp.dot(logits, wp_l, preferred_element_type=jnp.float32)
                     + bp)
    return outs


# ----------------------------------------------------------------------------
# Parameter packing: one 8-row-aligned, 128-lane f32 slab + static plan.
# ----------------------------------------------------------------------------
def pack_params(params, head_cfgs, input_dim, out_width=OUT_WIDTH, slab_lanes=SLAB_LANES):
    n_heads = len(head_cfgs)
    n_classes = [c["n_class"] for c in head_cfgs]
    lane_offs = [int(x) for x in np.cumsum([0] + n_classes[:-1])]
    assert sum(n_classes) <= out_width, "num_classes do not fit the fused output slab"
    assert out_width <= slab_lanes

    it = iter(params)
    blocks = []          # (row_offset, ndarray)
    row_cursor = [0]
    flops_tok = [0]      # per-token FLOPs from TRUE (unpadded) shapes
    transc_tok = [0]

    def add_block(arr):
        arr = np.asarray(arr, np.float32)
        r, c = arr.shape
        off = row_cursor[0]
        blocks.append((off, arr))
        row_cursor[0] += ((r + 7) // 8) * 8          # keep every block 8-sublane aligned
        return (off, r, c)

    heads_plan = []
    for hi, cfg in enumerate(head_cfgs):
        has_proj = hi < n_heads - 1
        dims = cfg["dims"]
        nc = cfg["n_class"]
        lo = lane_offs[hi]

        # --- consume this head's params from the flat list (same order as init_params) ---
        W0 = np.asarray(next(it), np.float32)
        b0 = np.asarray(next(it), np.float32)
        layer_entries = []
        for li in range(1, len(dims)):
            W = np.asarray(next(it), np.float32)
            b = np.asarray(next(it), np.float32)
            norm = cfg["norms"][li - 1]
            if norm == "batch":
                # TODO(synk): nn.BatchNorm1d ('batch') normalisation not implemented.
                raise NotImplementedError("'batch' normalisation (nn.BatchNorm1d) not supported")
            entry = dict(norm=norm, act=cfg["acts"][li], w=W, b=b)
            if norm == "layer":
                entry["gamma"] = np.asarray(next(it), np.float32)
                entry["beta"] = np.asarray(next(it), np.float32)
            layer_entries.append(entry)
        Wo = np.asarray(next(it), np.float32)
        bo = np.asarray(next(it), np.float32)
        if has_proj:
            Wp_f = np.asarray(next(it), np.float32)
            Wp_l = np.asarray(next(it), np.float32)
            bp = np.asarray(next(it), np.float32)

        # --- build transformed, fused blocks ---
        head = dict(act0=cfg["acts"][0], d0=int(dims[0]), fused_proj=has_proj,
                    n_class=nc, lane_off=lo)
        if has_proj:
            # Fuse layer-0 weight with the chaining projection's feature block: one matmul,
            # result columns [0:d0] = hidden pre-act, [d0:d0+D] = feats @ Wp_feat (exact).
            head["w0"] = add_block(np.concatenate([W0, Wp_f], axis=1))     # (D, d0 + D)
            flops_tok[0] += 2 * W0.shape[0] * (W0.shape[1] + Wp_f.shape[1])
        else:
            head["w0"] = add_block(W0)                                     # (D, d0)
            flops_tok[0] += 2 * W0.shape[0] * W0.shape[1]
        head["b0"] = add_block(b0)
        if cfg["acts"][0] in ("tanh", "gelu"):
            transc_tok[0] += int(dims[0])

        layers_plan = []
        for entry in layer_entries:
            lp = dict(act=entry["act"], norm=entry["norm"],
                      w=add_block(entry["w"]), b=add_block(entry["b"]))
            flops_tok[0] += 2 * entry["w"].shape[0] * entry["w"].shape[1]
            if entry["act"] in ("tanh", "gelu"):
                transc_tok[0] += int(entry["w"].shape[1])
            if entry["norm"] == "layer":
                lp["gamma"] = add_block(entry["gamma"])
                lp["beta"] = add_block(entry["beta"])
                transc_tok[0] += 1
            layers_plan.append(lp)
        head["layers"] = layers_plan

        # out_proj weight/bias lane-padded to this head's slot of the OUT_WIDTH output slab
        # -> single dense store of the fused logits slab.
        Wo_pad = np.zeros((dims[-1], out_width), np.float32)
        Wo_pad[:, lo:lo + nc] = Wo
        bo_pad = np.zeros((1, out_width), np.float32)
        bo_pad[0, lo:lo + nc] = bo[0]
        head["wo"] = add_block(Wo_pad)
        head["bo"] = add_block(bo_pad)
        flops_tok[0] += 2 * Wo.shape[0] * Wo.shape[1]

        if has_proj:
            # Pre-fold the chaining projection's logits term (perf-review opt 1):
            #   logits @ Wp_l + bp == x @ (Wo @ Wp_l) + (bo @ Wp_l + bp)
            # Removes the padded-K chaining matmuls and the big Wp_l slab blocks entirely.
            Wo_fused = Wo @ Wp_l                  # (d_last, D)
            bp_fused = bo @ Wp_l + bp             # (1, D)
            head["wof"] = add_block(Wo_fused)
            head["bpf"] = add_block(bp_fused)
            flops_tok[0] += 2 * Wo_fused.shape[0] * Wo_fused.shape[1]
        heads_plan.append(head)

    r_total = row_cursor[0]
    slab = np.zeros((r_total, slab_lanes), np.float32)
    for off, arr in blocks:
        r, c = arr.shape
        slab[off:off + r, :c] = arr

    plan = dict(heads=heads_plan, out_width=int(out_width), input_dim=int(input_dim),
                n_classes=tuple(n_classes), lane_offs=tuple(lane_offs),
                flops_per_token=int(flops_tok[0]),
                transcendentals_per_token=int(transc_tok[0]))
    return jnp.asarray(slab), plan


# ----------------------------------------------------------------------------
# The Pallas kernel (lazy slab reads, fused matmuls, single dense output store).
# ----------------------------------------------------------------------------
def make_kernel(plan):
    heads = plan["heads"]
    n_heads = len(heads)
    D = plan["input_dim"]

    def _read(slab_ref, blk):
        off, r, c = blk
        return slab_ref[off:off + r, 0:c]

    def kernel(feat_ref, slab_ref, out_ref):
        f32 = jnp.float32
        feats = feat_ref[...].astype(f32)     # single up-cast point (bf16 transport friendly)
        acc = None
        for hi, head in enumerate(heads):
            d0 = head["d0"]
            # --- layer 0 (fused with the chaining projection's feature block when present) ---
            w0 = _read(slab_ref, head["w0"])
            y = jnp.dot(feats, w0, preferred_element_type=f32)
            if head["fused_proj"]:
                fp = y[:, d0:d0 + D]          # feats @ Wp_feat
                y = y[:, 0:d0]
            b0 = _read(slab_ref, head["b0"])
            x = _ACT[head["act0"]](y + b0)    # Dropout = identity in eval
            # --- hidden layers 1..L-1 ---
            for lp in head["layers"]:
                w = _read(slab_ref, lp["w"])
                b = _read(slab_ref, lp["b"])
                x = jnp.dot(x, w, preferred_element_type=f32) + b
                if lp["norm"] == "layer":
                    gamma = _read(slab_ref, lp["gamma"])
                    beta = _read(slab_ref, lp["beta"])
                    mu = jnp.mean(x, axis=-1, keepdims=True)
                    var = jnp.mean((x - mu) * (x - mu), axis=-1, keepdims=True)
                    x = (x - mu) * jax.lax.rsqrt(var + _LN_EPS) * gamma + beta
                x = _ACT[lp["act"]](x)
            # --- out_proj, lane-padded to this head's slot of the fused OUT_WIDTH slab ---
            wo = _read(slab_ref, head["wo"])
            bo = _read(slab_ref, head["bo"])
            s = jnp.dot(x, wo, preferred_element_type=f32) + bo   # (tm, OUT_WIDTH)
            acc = s if acc is None else acc + s
            # --- conditional chaining with the logits term pre-folded into the weights ---
            if hi < n_heads - 1:
                wof = _read(slab_ref, head["wof"])   # Wo @ Wp_logit
                bpf = _read(slab_ref, head["bpf"])   # bo @ Wp_logit + bp
                feats = fp + jnp.dot(x, wof, preferred_element_type=f32) + bpf
        out_ref[...] = acc.astype(out_ref.dtype)     # one full-width store per grid step

    return kernel


# ----------------------------------------------------------------------------
# Wrapper: tile tokens over a parallel grid, one packed weight slab, one fused output.
# ----------------------------------------------------------------------------
def conditional_multi_tagging_head(features, slab, plan, tm=2048,
                                   feat_dtype=jnp.float32, out_dtype=jnp.float32):
    """features: (B, T, D).  Returns list of (B, T, n_class_i) logits, one per sub-head.

    tm: token tile per grid step.  Pick >=2048 at realistic M (step overhead ~0.35us must be
        amortized); it is clamped to M automatically.  On v7x keep grid >= 2 steps so both
        TensorCores get work.
    feat_dtype / out_dtype: set jnp.bfloat16 in production on v6e/v7x to halve the feature read
        / output write HBM streams (kernel computes in f32 either way); f32 defaults keep the
        bit-tight test below.
    """
    Bb, Tt, D = features.shape
    assert D == plan["input_dim"]
    ow = plan["out_width"]
    M = Bb * Tt

    tm = max(8, (int(tm) // 8) * 8)
    tm = min(tm, ((M + 7) // 8) * 8)
    grid_m = pl.cdiv(M, tm)
    M_pad = grid_m * tm

    feats2d = features.reshape(M, D).astype(feat_dtype)
    if M_pad != M:
        # Only hit when tm does not divide M; choose tm | M to avoid this extra HBM pass.
        feats2d = jnp.concatenate(
            [feats2d, jnp.zeros((M_pad - M, D), feat_dtype)], axis=0)

    kernel = make_kernel(plan)
    cost = pl.CostEstimate(
        flops=plan["flops_per_token"] * M_pad,
        transcendentals=plan["transcendentals_per_token"] * M_pad,
        bytes_accessed=(M_pad * (jnp.dtype(feat_dtype).itemsize * D
                                 + jnp.dtype(out_dtype).itemsize * ow)
                        + slab.size * slab.dtype.itemsize))

    out = pl.pallas_call(
        kernel,
        grid=(grid_m,),
        in_specs=[
            pl.BlockSpec((tm, D), lambda m: (m, 0)),       # token tile of features
            # Packed weights: constant block index -> the pipeline fetches this block once and
            # elides the DMA on every subsequent grid step.
            pl.BlockSpec(slab.shape, lambda m: (0, 0)),
        ],
        out_specs=pl.BlockSpec((tm, ow), lambda m: (m, 0)),  # OUT_WIDTH-lane fused logits slab
        out_shape=jax.ShapeDtypeStruct((M_pad, ow), out_dtype),
        compiler_params=pltpu.CompilerParams(dimension_semantics=("parallel",)),
        cost_estimate=cost,
    )(feats2d, slab)

    if M_pad != M:
        out = out[:M]
    results = []
    for lo, nc in zip(plan["lane_offs"], plan["n_classes"]):
        results.append(out[:, lo:lo + nc].reshape(Bb, Tt, nc))
    return results


# ----------------------------------------------------------------------------
# Main
# ----------------------------------------------------------------------------
if __name__ == "__main__":
    key = jax.random.PRNGKey(0)
    key, kf, kp = jax.random.split(key, 3)

    features = jax.random.normal(kf, (B, T, INPUT_DIM), jnp.float32)
    params = init_params(kp, INPUT_DIM, HEAD_CFGS)
    slab, plan = pack_params(params, HEAD_CFGS, INPUT_DIM)

    # Toy-size run: M = 128, tm = 64 -> grid=(2,) (two parallel steps, tm | M so no pad/slice).
    # At production M use the default tm=2048.
    outs = conditional_multi_tagging_head(features, slab, plan, tm=64)
    outs = [jax.block_until_ready(o) for o in outs]

    # Pure-JAX reference (faithful, un-fused math) for a correctness check.
    refs = _forward_ref(features.reshape(B * T, INPUT_DIM), params, HEAD_CFGS)
    refs = [r.reshape(B, T, -1) for r in refs]

    for o, r, cfg in zip(outs, refs, HEAD_CFGS):
        assert o.shape == (B, T, cfg["n_class"]), (o.shape, cfg["n_class"])
        np.testing.assert_allclose(np.asarray(o), np.asarray(r), rtol=5e-5, atol=5e-5)

    print("KERNEL_OK")
</pallas_src>

<mosaic_0001>
module attributes {stable_mosaic.version = 11 : i64} {
  func.func @kernel(%arg0: i32, %arg1: memref<64x32xf32, #tpu.memory_space<vmem>>, %arg2: memref<344x128xf32, #tpu.memory_space<vmem>>, %arg3: memref<64x32xf32, #tpu.memory_space<vmem>>) attributes {dimension_semantics = [#tpu.dimension_semantics<parallel>], iteration_bounds = array<i64: 2>, scalar_prefetch = 0 : i64, scratch_operands = 0 : i64, tpu.core_type = #tpu.core_type<tc>, window_params = [{transform_indices = @transform_0, window_bounds = array<i64: 64, 32>}, {pipeline_mode = #tpu.pipeline_mode<synchronous>, transform_indices = @transform_1, window_bounds = array<i64: 344, 128>}, {transform_indices = @transform_2, window_bounds = array<i64: 64, 32>}]} {
    %c0 = arith.constant 0 : index
    %c0_0 = arith.constant 0 : index
    %0 = vector.load %arg1[%c0, %c0_0] : memref<64x32xf32, #tpu.memory_space<vmem>>, vector<64x32xf32>
    %c0_1 = arith.constant 0 : index
    %c0_2 = arith.constant 0 : index
    %1 = vector.load %arg2[%c0_1, %c0_2] : memref<344x128xf32, #tpu.memory_space<vmem>>, vector<32x64xf32>
    %cst = arith.constant dense<0.000000e+00> : vector<64x64xf32>
    %2 = tpu.matmul %0, %1, %cst {dimension_numbers = #tpu.dot_dimension_numbers<[1], [0], [0], [1], [0, 0, 1, 1], [], []>} : vector<64x32xf32>, vector<32x64xf32>, vector<64x64xf32> -> vector<64x64xf32>
    %3 = vector.extract_strided_slice %2 {offsets = [0, 32], sizes = [64, 32], strides = [1, 1]} : vector<64x64xf32> to vector<64x32xf32>
    %4 = vector.extract_strided_slice %2 {offsets = [0, 0], sizes = [64, 32], strides = [1, 1]} : vector<64x64xf32> to vector<64x32xf32>
    %c32 = arith.constant 32 : index
    %c0_3 = arith.constant 0 : index
    %5 = vector.load %arg2[%c32, %c0_3] : memref<344x128xf32, #tpu.memory_space<vmem>>, vector<1x32xf32>
    %6 = vector.broadcast %5 : vector<1x32xf32> to vector<64x32xf32>
    %7 = arith.addf %4, %6 : vector<64x32xf32>
    %8 = math.tanh %7 : vector<64x32xf32>
    %c40 = arith.constant 40 : index
    %c0_4 = arith.constant 0 : index
    %9 = vector.load %arg2[%c40, %c0_4] : memref<344x128xf32, #tpu.memory_space<vmem>>, vector<32x32xf32>
    %c72 = arith.constant 72 : index
    %c0_5 = arith.constant 0 : index
    %10 = vector.load %arg2[%c72, %c0_5] : memref<344x128xf32, #tpu.memory_space<vmem>>, vector<1x32xf32>
    %cst_6 = arith.constant dense<0.000000e+00> : vector<64x32xf32>
    %11 = tpu.matmul %8, %9, %cst_6 {dimension_numbers = #tpu.dot_dimension_numbers<[1], [0], [0], [1], [0, 0, 1, 1], [], []>} : vector<64x32xf32>, vector<32x32xf32>, vector<64x32xf32> -> vector<64x32xf32>
    %12 = vector.broadcast %10 : vector<1x32xf32> to vector<64x32xf32>
    %13 = arith.addf %11, %12 : vector<64x32xf32>
    %c80 = arith.constant 80 : index
    %c0_7 = arith.constant 0 : index
    %14 = vector.load %arg2[%c80, %c0_7] : memref<344x128xf32, #tpu.memory_space<vmem>>, vector<32x32xf32>
    %c112 = arith.constant 112 : index
    %c0_8 = arith.constant 0 : index
    %15 = vector.load %arg2[%c112, %c0_8] : memref<344x128xf32, #tpu.memory_space<vmem>>, vector<1x32xf32>
    %cst_9 = arith.constant dense<0.000000e+00> : vector<64x32xf32>
    %16 = tpu.matmul %8, %14, %cst_9 {dimension_numbers = #tpu.dot_dimension_numbers<[1], [0], [0], [1], [0, 0, 1, 1], [], []>} : vector<64x32xf32>, vector<32x32xf32>, vector<64x32xf32> -> vector<64x32xf32>
    %17 = arith.addf %3, %16 : vector<64x32xf32>
    %18 = vector.broadcast %15 : vector<1x32xf32> to vector<64x32xf32>
    %19 = arith.addf %17, %18 : vector<64x32xf32>
    %c120 = arith.constant 120 : index
    %c0_10 = arith.constant 0 : index
    %20 = vector.load %arg2[%c120, %c0_10] : memref<344x128xf32, #tpu.memory_space<vmem>>, vector<32x64xf32>
    %cst_11 = arith.constant dense<0.000000e+00> : vector<64x64xf32>
    %21 = tpu.matmul %19, %20, %cst_11 {dimension_numbers = #tpu.dot_dimension_numbers<[1], [0], [0], [1], [0, 0, 1, 1], [], []>} : vector<64x32xf32>, vector<32x64xf32>, vector<64x64xf32> -> vector<64x64xf32>
    %22 = vector.extract_strided_slice %21 {offsets = [0, 32], sizes = [64, 32], strides = [1, 1]} : vector<64x64xf32> to vector<64x32xf32>
    %23 = vector.extract_strided_slice %21 {offsets = [0, 0], sizes = [64, 32], strides = [1, 1]} : vector<64x64xf32> to vector<64x32xf32>
    %c152 = arith.constant 152 : index
    %c0_12 = arith.constant 0 : index
    %24 = vector.load %arg2[%c152, %c0_12] : memref<344x128xf32, #tpu.memory_space<vmem>>, vector<1x32xf32>
    %25 = vector.broadcast %24 : vector<1x32xf32> to vector<64x32xf32>
    %26 = arith.addf %23, %25 : vector<64x32xf32>
    %27 = math.tanh %26 : vector<64x32xf32>
    %c160 = arith.constant 160 : index
    %c0_13 = arith.constant 0 : index
    %28 = vector.load %arg2[%c160, %c0_13] : memref<344x128xf32, #tpu.memory_space<vmem>>, vector<32x16xf32>
    %c192 = arith.constant 192 : index
    %c0_14 = arith.constant 0 : index
    %29 = vector.load %arg2[%c192, %c0_14] : memref<344x128xf32, #tpu.memory_space<vmem>>, vector<1x16xf32>
    %cst_15 = arith.constant dense<0.000000e+00> : vector<64x16xf32>
    %30 = tpu.matmul %27, %28, %cst_15 {dimension_numbers = #tpu.dot_dimension_numbers<[1], [0], [0], [1], [0, 0, 1, 1], [], []>} : vector<64x32xf32>, vector<32x16xf32>, vector<64x16xf32> -> vector<64x16xf32>
    %31 = vector.broadcast %29 : vector<1x16xf32> to vector<64x16xf32>
    %32 = arith.addf %30, %31 : vector<64x16xf32>
    %c200 = arith.constant 200 : index
    %c0_16 = arith.constant 0 : index
    %33 = vector.load %arg2[%c200, %c0_16] : memref<344x128xf32, #tpu.memory_space<vmem>>, vector<1x16xf32>
    %c208 = arith.constant 208 : index
    %c0_17 = arith.constant 0 : index
    %34 = vector.load %arg2[%c208, %c0_17] : memref<344x128xf32, #tpu.memory_space<vmem>>, vector<1x16xf32>
    %cst_18 = arith.constant dense<0.000000e+00> : vector<64xf32>
    %35 = vector.multi_reduction <add>, %32, %cst_18 [1] : vector<64x16xf32> to vector<64xf32>
    %36 = vector.shape_cast %35 : vector<64xf32> to vector<64x1xf32>
    %cst_19 = arith.constant 1.600000e+01 : f32
    %37 = vector.broadcast %cst_19 : f32 to vector<64x1xf32>
    %38 = arith.divf %36, %37 : vector<64x1xf32>
    %39 = vector.broadcast %38 : vector<64x1xf32> to vector<64x16xf32>
    %40 = arith.subf %32, %39 : vector<64x16xf32>
    %41 = vector.broadcast %38 : vector<64x1xf32> to vector<64x16xf32>
    %42 = arith.subf %32, %41 : vector<64x16xf32>
    %43 = arith.mulf %40, %42 : vector<64x16xf32>
    %cst_20 = arith.constant dense<0.000000e+00> : vector<64xf32>
    %44 = vector.multi_reduction <add>, %43, %cst_20 [1] : vector<64x16xf32> to vector<64xf32>
    %45 = vector.shape_cast %44 : vector<64xf32> to vector<64x1xf32>
    %cst_21 = arith.constant 1.600000e+01 : f32
    %46 = vector.broadcast %cst_21 : f32 to vector<64x1xf32>
    %47 = arith.divf %45, %46 : vector<64x1xf32>
    %48 = vector.broadcast %38 : vector<64x1xf32> to vector<64x16xf32>
    %49 = arith.subf %32, %48 : vector<64x16xf32>
    %cst_22 = arith.constant 9.99999974E-6 : f32
    %50 = vector.broadcast %cst_22 : f32 to vector<64x1xf32>
    %51 = arith.addf %47, %50 : vector<64x1xf32>
    %52 = math.rsqrt %51 : vector<64x1xf32>
    %53 = vector.broadcast %52 : vector<64x1xf32> to vector<64x16xf32>
    %54 = arith.mulf %49, %53 : vector<64x16xf32>
    %55 = vector.broadcast %33 : vector<1x16xf32> to vector<64x16xf32>
    %56 = arith.mulf %54, %55 : vector<64x16xf32>
    %57 = vector.broadcast %34 : vector<1x16xf32> to vector<64x16xf32>
    %58 = arith.addf %56, %57 : vector<64x16xf32>
    %cst_23 = arith.constant 0.000000e+00 : f32
    %59 = vector.broadcast %cst_23 : f32 to vector<64x16xf32>
    %60 = arith.maximumf %58, %59 : vector<64x16xf32>
    %c216 = arith.constant 216 : index
    %c0_24 = arith.constant 0 : index
    %61 = vector.load %arg2[%c216, %c0_24] : memref<344x128xf32, #tpu.memory_space<vmem>>, vector<16x32xf32>
    %c232 = arith.constant 232 : index
    %c0_25 = arith.constant 0 : index
    %62 = vector.load %arg2[%c232, %c0_25] : memref<344x128xf32, #tpu.memory_space<vmem>>, vector<1x32xf32>
    %cst_26 = arith.constant dense<0.000000e+00> : vector<64x32xf32>
    %63 = tpu.matmul %60, %61, %cst_26 {dimension_numbers = #tpu.dot_dimension_numbers<[1], [0], [0], [1], [0, 0, 1, 1], [], []>} : vector<64x16xf32>, vector<16x32xf32>, vector<64x32xf32> -> vector<64x32xf32>
    %64 = vector.broadcast %62 : vector<1x32xf32> to vector<64x32xf32>
    %65 = arith.addf %63, %64 : vector<64x32xf32>
    %66 = arith.addf %13, %65 : vector<64x32xf32>
    %c240 = arith.constant 240 : index
    %c0_27 = arith.constant 0 : index
    %67 = vector.load %arg2[%c240, %c0_27] : memref<344x128xf32, #tpu.memory_space<vmem>>, vector<16x32xf32>
    %c256 = arith.constant 256 : index
    %c0_28 = arith.constant 0 : index
    %68 = vector.load %arg2[%c256, %c0_28] : memref<344x128xf32, #tpu.memory_space<vmem>>, vector<1x32xf32>
    %cst_29 = arith.constant dense<0.000000e+00> : vector<64x32xf32>
    %69 = tpu.matmul %60, %67, %cst_29 {dimension_numbers = #tpu.dot_dimension_numbers<[1], [0], [0], [1], [0, 0, 1, 1], [], []>} : vector<64x16xf32>, vector<16x32xf32>, vector<64x32xf32> -> vector<64x32xf32>
    %70 = arith.addf %22, %69 : vector<64x32xf32>
    %71 = vector.broadcast %68 : vector<1x32xf32> to vector<64x32xf32>
    %72 = arith.addf %70, %71 : vector<64x32xf32>
    %c264 = arith.constant 264 : index
    %c0_30 = arith.constant 0 : index
    %73 = vector.load %arg2[%c264, %c0_30] : memref<344x128xf32, #tpu.memory_space<vmem>>, vector<32x32xf32>
    %cst_31 = arith.constant dense<0.000000e+00> : vector<64x32xf32>
    %74 = tpu.matmul %72, %73, %cst_31 {dimension_numbers = #tpu.dot_dimension_numbers<[1], [0], [0], [1], [0, 0, 1, 1], [], []>} : vector<64x32xf32>, vector<32x32xf32>, vector<64x32xf32> -> vector<64x32xf32>
    %c296 = arith.constant 296 : index
    %c0_32 = arith.constant 0 : index
    %75 = vector.load %arg2[%c296, %c0_32] : memref<344x128xf32, #tpu.memory_space<vmem>>, vector<1x32xf32>
    %76 = vector.broadcast %75 : vector<1x32xf32> to vector<64x32xf32>
    %77 = arith.addf %74, %76 : vector<64x32xf32>
    %cst_33 = arith.constant 0.000000e+00 : f32
    %78 = vector.broadcast %cst_33 : f32 to vector<64x32xf32>
    %79 = arith.maximumf %77, %78 : vector<64x32xf32>
    %c304 = arith.constant 304 : index
    %c0_34 = arith.constant 0 : index
    %80 = vector.load %arg2[%c304, %c0_34] : memref<344x128xf32, #tpu.memory_space<vmem>>, vector<32x32xf32>
    %c336 = arith.constant 336 : index
    %c0_35 = arith.constant 0 : index
    %81 = vector.load %arg2[%c336, %c0_35] : memref<344x128xf32, #tpu.memory_space<vmem>>, vector<1x32xf32>
    %cst_36 = arith.constant dense<0.000000e+00> : vector<64x32xf32>
    %82 = tpu.matmul %79, %80, %cst_36 {dimension_numbers = #tpu.dot_dimension_numbers<[1], [0], [0], [1], [0, 0, 1, 1], [], []>} : vector<64x32xf32>, vector<32x32xf32>, vector<64x32xf32> -> vector<64x32xf32>
    %83 = vector.broadcast %81 : vector<1x32xf32> to vector<64x32xf32>
    %84 = arith.addf %82, %83 : vector<64x32xf32>
    %85 = arith.addf %66, %84 : vector<64x32xf32>
    %c0_37 = arith.constant 0 : index
    %c0_38 = arith.constant 0 : index
    %86 = vector.load %arg3[%c0_37, %c0_38] : memref<64x32xf32, #tpu.memory_space<vmem>>, vector<64x32xf32>
    tpu.vector_store %arg3[%c0_37, %c0_38], %85 {strides = array<i32>} : memref<64x32xf32, #tpu.memory_space<vmem>>, vector<64x32xf32>,
    return
  }
  func.func @transform_0(%arg0: i32) -> (i32, i32) {
    %c0_i32 = arith.constant 0 : i32
    %c0_i32_0 = arith.constant 0 : i32
    return %arg0, %c0_i32 : i32, i32
  }
  func.func @transform_1(%arg0: i32) -> (i32, i32) {
    %c0_i32 = arith.constant 0 : i32
    %c0_i32_0 = arith.constant 0 : i32
    %c0_i32_1 = arith.constant 0 : i32
    return %c0_i32, %c0_i32_0 : i32, i32
  }
  func.func @transform_2(%arg0: i32) -> (i32, i32) {
    %c0_i32 = arith.constant 0 : i32
    %c0_i32_0 = arith.constant 0 : i32
    return %arg0, %c0_i32 : i32, i32
  }
}

</mosaic_0001>

<bundles_post_ra>
// kernel: tpu_custom_call.1
= control target key start
LH: loop header
LB: loop body
LE: loop exit
PB: predicated region body
PF: predicated region fallthrough
CT: control target
= control target key end

     0   :  { %7 = vsyncpa [#allocation3], 0  ;;  %s2278_s9 = smov 0   ;;  %s2642_s0 = inlined_call_operand.vmem [shape: f32[128,32], index: 0, kind: input, shape index: {}]   ;;  %s2643_s1 = inlined_call_operand.hbm [shape: f32[344,128], index: 1, kind: input, shape index: {}]   ;;  %s2644_s2 = inlined_call_operand.vmem [shape: f32[128,32], index: 2, kind: output, shape index: {}]  }
   0x1 LB: > { %s1769_s10 = sadd.s32 4294967295, %s2256_s9   ;;  %p1771_p0 = scmp.ge.s32.totalorder %s2256_s9, 1  ;;  %s2256_s9 = sphi %s2278_s9, %s13_s9  }
   0x2   : > { %p91_p1 = scmp.lt.s32.totalorder %s2256_s9, 3  ;;  %s2258_s11 = smov [#allocation2]  }
   0x3   : > { %s103_s12 = sshll.u32 %s2258_s11, 4  ;;  %p2290_p3 = scmp.eq.s32.totalorder %s1769_s10, 0  ;;  %s104_s12 = int_to_ptr.vmem [resolvable:$true] %s103_s12 }
   0x4   : > { %p2286_p2 = pnand %p1771_p0, %p91_p1  ;;  %s2231_s15 = scalar_lea.vmem %s104_s12, 5504 }
   0x5   : > { %p2232_p7 = scmp.ne.s32.totalorder %s104_s12, %s2231_s15  ;;  %p2239_p10 = scmp.lt.s32.totalorder %s104_s12, %s104_s12 }
   0x6   : > { %p2153_p4 = pneg %p2286_p2  ;;  %p2240_p11 = scmp.lt.s32.totalorder %s2231_s15, %s2231_s15 }
   0x8   : > { %p2154_p5 = pnand %p2290_p3, %p2153_p4  ;;  %p2241_p12 = por %p2240_p11, %p2239_p10 }
   0xa   : > { %p2222_p6 = pneg %p2154_p5 }
   0xc   : > { %p2234_p8 = pnand %p2232_p7, %p2222_p6 }
   0xe   : > { %p2235_p9 = pneg %p2234_p8 }
  0x10   : > { %p2242_p13 = pnand %p2241_p12, %p2235_p9 }
  0x12   : > { %2245 = shalt.err (!%p2242_p13)
}
  0x13   : > { %s2259_s16 = smov 128   ;;  %s2260_s17 = smov 8  }
  0x14   : > { %2156 = dma.hbm_to_vmem [thread:$0]  (!%p2154_p5), %s2643_s1, 5504, %s104_s12, [#allocation3], %s2259_s16, %s2259_s16, %s2260_s17  }
  0x15   : > { %128 = sbr.rel (%p2286_p2) target bundleno = 2244 (0x8c4), region = 28 }
  0x1a   : > { %2251 = dma.done.wait (%p2290_p3), [#allocation3], 5504  }
  0x1b   : > { %2253 = vsyncadd (%p2290_p3), [#allocation3], 4294961792  ;;  %s1776_s20 = sshll.u32 %s1769_s10, 3  ;;  %vm174_vm0 = vcmask 261120   ;;  %v173_v0 = vld [vmem:[#allocation2 + $0x18] sm:$0xff]  ;;  %v172_v1 = vld [vmem:[#allocation2 + $0x10] sm:$0xff] }
  0x1c   : > { %p151_p0 = scmp.lt.s32.totalorder %s1776_s20, 15  ;;  %1969 = vmatprep.subr.mxu0 %v173_v0  ;;  %2141 = vmatprep.subr.mxu1 %v173_v0  ;;  %v171_v3 = vld [vmem:[#allocation2 + $0x8] sm:$0xff]  ;;  %v170_v4 = vld [vmem:[#allocation2] sm:$0xff]  ;;  %v327_v15 = vld [vmem:[#allocation2 + $0x38] sm:$0xff]  ;;  %s2261_s25 = smov 32   ;;  %vm939_vm1 = vcmask 130048  }
  0x1d   : > { %1970 = vmatpush3.msra.mxu0 %v173_v0  ;;  %2145 = vmatpush3.msra.mxu1 %v173_v0  ;;  %v466_v12 = vld [vmem:[#allocation2 + $0x68] sm:$0xff]  ;;  %v328_v13 = vld [vmem:[#allocation2 + $0x40] sm:$0xff]  ;;  %v464_v16 = vld [vmem:[#allocation2 + $0x58] sm:$0xff]  ;;  %s2262_s26 = smov 96  }
  0x1e   : > { %s2648_s20 = smov (!%p151_p0, %s1776_s20), 15  ;;  %1971 = vmatprep.subr.mxu0 %v172_v1  ;;  %2142 = vmatprep.subr.mxu1 %v172_v1  ;;  %v465_v14 = vld [vmem:[#allocation2 + $0x60] sm:$0xff]  ;;  %v326_v17 = vld [vmem:[#allocation2 + $0x30] sm:$0xff]  ;;  %v325_v19 = vld [vmem:[#allocation2 + $0x28] sm:$0xff] }
  0x1f   : > { %s1777_s21 = sshll.u32 %s2648_s20, 3  ;;  %1972 = vmatpush3.msra.mxu0 %v172_v1  ;;  %2146 = vmatpush3.msra.mxu1 %v172_v1  ;;  %v463_v18 = vld [vmem:[#allocation2 + $0x50] sm:$0xff]  ;;  %v1788_v20 = vld [vmem:[#allocation2 + $0x20] ss:$0 sm:$0xff]  ;;  %v631_v53 = vld [vmem:[#allocation2 + $0x88] sm:$0xff] }
  0x20   : > { %s2315_s24 = scalar_lea.vmem %s2642_s0, %s1777_s21  ;;  %1973 = vmatprep.subr.mxu0 %v171_v3  ;;  %2143 = vmatprep.subr.mxu1 %v171_v3  ;;  %v1806_v45 = vld [vmem:[#allocation2 + $0x70] ss:$0 sm:$0xff]  ;;  %v630_v56 = vld [vmem:[#allocation2 + $0x80] sm:$0xff]  ;;  %v629_v57 = vld [vmem:[#allocation2 + $0x78] sm:$0xff]  ;;  %s2611_s29 = scalar_lea.vmem %s2644_s2, %s1777_s21 }
  0x21   : > { %v162_v2 = vld [vmem:[%s2315_s24] sm:$0xff]  ;;  %1974 = vmatpush3.msra.mxu0 %v171_v3  ;;  %v163_v5 = vld [vmem:[%s2315_s24 + $0x8] sm:$0xff]  ;;  %v164_v6 = vld [vmem:[%s2315_s24 + $0x10] sm:$0xff]  ;;  %2147 = vmatpush3.msra.mxu1 %v171_v3 }
  0x22   : > { %1977 = vmatprep.mubr.msk.f32.mxu0 %vm174_vm0, %v162_v2  ;;  %1975 = vmatprep.subr.mxu0 %v170_v4  ;;  %v166_v7 = vld [vmem:[%s2315_s24 + $0x20] sm:$0xff]  ;;  %v167_v8 = vld [vmem:[%s2315_s24 + $0x28] sm:$0xff]  ;;  %v168_v9 = vld [vmem:[%s2315_s24 + $0x30] sm:$0xff] }
  0x23   : > { %1976 = vmatpush3.msra.mxu0 %v170_v4  ;;  %2144 = vmatprep.subr.mxu1 %v170_v4  ;;  %v165_v10 = vld [vmem:[%s2315_s24 + $0x18] sm:$0xff]  ;;  %v632_v52 = vld [vmem:[#allocation2 + $0x90] sm:$0xff] }
  0x24   : > { %1978 = vmatmul.mubr.msk.f32.vlgmr.msra.gmra.mxu0 %vm174_vm0, %v163_v5  ;;  %2148 = vmatpush3.msra.mxu1 %v170_v4  ;;  %v169_v11 = vld [vmem:[%s2315_s24 + $0x38] sm:$0xff] }
  0x25   : > { %1980 = vmatprep.mubr.msk.f32.mxu0 %vm174_vm0, %v164_v6  ;;  %1983 = vmatprep.mubr.msk.f32.mxu1 %vm174_vm0, %v166_v7 }
  0x26   : > { %1984 = vmatmul.mubr.msk.f32.vlgmr.msra.gmra.mxu1 %vm174_vm0, %v167_v8  ;;  %2009 = vmatprep.subr.mxu0 %v466_v12 }
  0x27   : > { %1986 = vmatprep.mubr.msk.f32.mxu1 %vm174_vm0, %v168_v9  ;;  %1989 = vmatprep.subr.mxu1 %v328_v13 }
  0x28   : > { %1981 = vmatmul.mubr.msk.f32.gmra.mxu0 %vm174_vm0, %v165_v10  ;;  %1990 = vmatpush3.msra.mxu1 %v328_v13 }
  0x29   : > { %2010 = vmatpush3.msra.mxu0 %v466_v12  ;;  %1991 = vmatprep.subr.mxu1 %v327_v15 }
  0x2a   : > { %1987 = vmatmul.mubr.msk.f32.gmra.mxu1 %vm174_vm0, %v169_v11  ;;  %2011 = vmatprep.subr.mxu0 %v465_v14 }
  0x2b   : > { %2012 = vmatpush3.msra.mxu0 %v465_v14  ;;  %1992 = vmatpush3.msra.mxu1 %v327_v15 }
  0x2c   : > { %2013 = vmatprep.subr.mxu0 %v464_v16  ;;  %1993 = vmatprep.subr.mxu1 %v326_v17 }
  0x2d   : > { %2014 = vmatpush3.msra.mxu0 %v464_v16  ;;  %1994 = vmatpush3.msra.mxu1 %v326_v17 }
  0x2e   : > { %2015 = vmatprep.subr.mxu0 %v463_v18  ;;  %1995 = vmatprep.subr.mxu1 %v325_v19 }
  0x2f   : > { %2016 = vmatpush3.msra.mxu0 %v463_v18  ;;  %1996 = vmatpush3.msra.mxu1 %v325_v19 }
  0x30   : > { %618 = vrot.lane.b32.xlu1 %v1806_v45, %s2261_s25  ;;  %2029 = vmatprep.subr.mxu1 %v632_v52 }
  0xa2   : > { %v619_v58 = vpop.permute.xlu1 %618 }
  0xe4   : > { %v2333_v21 = vpop.f32.mrf.mxu0 }
  0xe5   : > { %v310_v22 = vadd.f32 %v2333_v21, %v1788_v20 }
  0xe6   : > { %v2336_v23 = vpop.f32.mrf.mxu0  ;;  %v2338_v24 = vpop.f32.mrf.mxu1 }
  0xe7   : > { %v309_v25 = vadd.f32 %v1788_v20, %v2336_v23  ;;  %v314_v33 = vadd.f32 %v2338_v24, %v1788_v20 }
  0xe8   : > { %v2341_v26 = vpop.f32.mrf.mxu0  ;;  %v2343_v27 = vpop.f32.mrf.mxu1 }
  0xe9   : > { %2172 = vtanh.f32 %v309_v25  ;;  %v312_v28 = vadd.f32 %v2341_v26, %v1788_v20  ;;  %v313_v29 = vadd.f32 %v1788_v20, %v2343_v27 }
  0xea   : > { %2174 = vtanh.f32 %v310_v22  ;;  %v2347_v30 = vpop.f32.mrf.mxu0  ;;  %v2349_v31 = vpop.f32.mrf.mxu1 }
  0xeb   : > { %2176 = vtanh.f32 %v312_v28  ;;  %v311_v32 = vadd.f32 %v1788_v20, %v2347_v30  ;;  %v316_v36 = vadd.f32 %v2349_v31, %v1788_v20  ;;  %v801_v28 = vld [vmem:[#allocation2 + $0xb0] sm:$0xff] }
  0xec   : > { %2178 = vtanh.f32 %v313_v29  ;;  %v2353_v34 = vpop.f32.mrf.mxu1  ;;  %v800_v29 = vld [vmem:[#allocation2 + $0xa8] sm:$0xff] }
  0xed   : > { %2180 = vtanh.f32 %v311_v32  ;;  %v315_v35 = vadd.f32 %v1788_v20, %v2353_v34 }
  0xee   : > { %2182 = vtanh.f32 %v314_v33 }
  0xef   : > { %2184 = vtanh.f32 %v315_v35 }
  0xf0   : > { %2186 = vtanh.f32 %v316_v36 }
  0xf6   : > { %v2173_v37 = vpop.eup %2172 }
  0xf7   : > { %v2175_v38 = vpop.eup %2174  ;;  %1997 = vmatprep.mubr.msk.f32.mxu1 %vm174_vm0, %v2173_v37  ;;  %2017 = vmatprep.mubr.msk.f32.mxu0 %vm174_vm0, %v2173_v37 }
  0xf8   : > { %v2177_v39 = vpop.eup %2176  ;;  %1998 = vmatmul.mubr.msk.f32.vlgmr.msra.gmra.mxu1 %vm174_vm0, %v2175_v38  ;;  %2018 = vmatmul.mubr.msk.f32.vlgmr.msra.gmra.mxu0 %vm174_vm0, %v2175_v38 }
  0xf9   : > { %v2179_v40 = vpop.eup %2178  ;;  %2030 = vmatpush3.msra.mxu1 %v632_v52 }
  0xfa   : > { %v2181_v41 = vpop.eup %2180  ;;  %2031 = vmatprep.subr.mxu1 %v631_v53 }
  0xfb   : > { %2000 = vmatprep.mubr.msk.f32.mxu1 %vm174_vm0, %v2181_v41  ;;  %2020 = vmatprep.mubr.msk.f32.mxu0 %vm174_vm0, %v2181_v41  ;;  %v2183_v42 = vpop.eup %2182 }
  0xfc   : > { %2001 = vmatmul.mubr.msk.f32.gmra.mxu1 %vm174_vm0, %v2177_v39  ;;  %2021 = vmatmul.mubr.msk.f32.gmra.mxu0 %vm174_vm0, %v2177_v39  ;;  %v2185_v43 = vpop.eup %2184  ;;  %v1815_v39 = vld [vmem:[#allocation2 + $0x98] ss:$0 sm:$0xff] }
  0xfd   : > { %2003 = vmatprep.mubr.msk.f32.mxu1 %vm174_vm0, %v2179_v40  ;;  %2023 = vmatprep.mubr.msk.f32.mxu0 %vm174_vm0, %v2179_v40  ;;  %v2187_v44 = vpop.eup %2186 }
  0xfe   : > { %2032 = vmatpush3.msra.mxu1 %v631_v53 }
  0xff   : > { %2033 = vmatprep.subr.mxu1 %v630_v56 }
 0x100   : > { %2004 = vmatmul.mubr.msk.f32.gmra.mxu1 %vm174_vm0, %v2183_v42  ;;  %2024 = vmatmul.mubr.msk.f32.gmra.mxu0 %vm174_vm0, %v2183_v42 }
 0x101   : > { %2006 = vmatprep.mubr.msk.f32.mxu1 %vm174_vm0, %v2185_v43  ;;  %2026 = vmatprep.mubr.msk.f32.mxu0 %vm174_vm0, %v2185_v43 }
 0x102   : > { %2034 = vmatpush3.msra.mxu1 %v630_v56 }
 0x103   : > { %2035 = vmatprep.subr.mxu1 %v629_v57 }
 0x104   : > { %2007 = vmatmul.mubr.msk.f32.gmra.mxu1 %vm174_vm0, %v2187_v44  ;;  %2027 = vmatmul.mubr.msk.f32.gmra.mxu0 %vm174_vm0, %v2187_v44 }
 0x105   : > { %2036 = vmatpush3.msra.mxu1 %v629_v57 }
 0x1b8   : > { %v2019_v46 = vpop.f32.mrf.mxu0 }
 0x1ba   : > { %v534_v47 = vpop.f32.mrf.mxu0 }
 0x1bb   : > { %581 = vrot.lane.b32.xlu0 %v534_v47, %s2261_s25 }
 0x1bc   : > { %v2022_v48 = vpop.f32.mrf.mxu0 }
 0x1be   : > { %v544_v49 = vpop.f32.mrf.mxu0 }
 0x1bf   : > { %583 = vrot.lane.b32.xlu0 %v2019_v46, %s2261_s25  ;;  %585 = vrot.lane.b32.xlu1 %v544_v49, %s2261_s25 }
 0x1c0   : > { %v2025_v50 = vpop.f32.mrf.mxu0 }
 0x1c2   : > { %v554_v51 = vpop.f32.mrf.mxu0 }
 0x1c3   : > { %587 = vrot.lane.b32.xlu0 %v2022_v48, %s2261_s25  ;;  %589 = vrot.lane.b32.xlu1 %v554_v51, %s2261_s25 }
 0x1c4   : > { %v2028_v54 = vpop.f32.mrf.mxu0 }
 0x1c6   : > { %v564_v55 = vpop.f32.mrf.mxu0 }
 0x1c7   : > { %591 = vrot.lane.b32.xlu0 %v2025_v50, %s2261_s25  ;;  %593 = vrot.lane.b32.xlu1 %v564_v55, %s2261_s25 }
 0x1cb   : > { %595 = vrot.lane.b32.xlu0 %v2028_v54, %s2261_s25 }
 0x22d   : > { %v582_v59 = vpop.permute.xlu0 %581 }
 0x22e   : > { %v605_v60 = vadd.f32 %v582_v59, %v2336_v23 }
 0x230   : > { %v621_v61 = vadd.f32 %v619_v58, %v605_v60 }
 0x231   : > { %v584_v62 = vpop.permute.xlu0 %583  ;;  %v586_v63 = vpop.permute.xlu1 %585 }
 0x232   : > { %v606_v0 = vadd.f32 %v2333_v21, %v584_v62  ;;  %v607_v1 = vadd.f32 %v586_v63, %v2347_v30  ;;  %641 = vrot.lane.b32.xlu1 %v621_v61, %s2262_s26  ;;  %v799_v30 = vld [vmem:[#allocation2 + $0xa0] sm:$0xff] }
 0x234   : > { %v622_v2 = vadd.f32 %v619_v58, %v606_v0  ;;  %v623_v3 = vadd.f32 %v619_v58, %v607_v1  ;;  %v1816_v0 = vld [vmem:[#allocation2 + $0xc0] ss:$0 sm:$0xff] }
 0x235   : > { %v588_v4 = vpop.permute.xlu0 %587  ;;  %v590_v5 = vpop.permute.xlu1 %589 }
 0x236   : > { %v608_v6 = vadd.f32 %v2341_v26, %v588_v4  ;;  %v609_v7 = vadd.f32 %v590_v5, %v2343_v27  ;;  %643 = vrot.lane.b32.xlu0 %v622_v2, %s2262_s26  ;;  %645 = vrot.lane.b32.xlu1 %v623_v3, %s2262_s26  ;;  %v802_v27 = vld [vmem:[#allocation2 + $0xb8] sm:$0xff] }
 0x237   : > { %2049 = vmatprep.subr.mxu0 %v802_v27 }
 0x238   : > { %v624_v8 = vadd.f32 %v619_v58, %v608_v6  ;;  %v625_v9 = vadd.f32 %v619_v58, %v609_v7  ;;  %2050 = vmatpush3.msra.mxu0 %v802_v27 }
 0x239   : > { %v592_v10 = vpop.permute.xlu0 %591  ;;  %v594_v11 = vpop.permute.xlu1 %593  ;;  %2051 = vmatprep.subr.mxu0 %v801_v28 }
 0x23a   : > { %v610_v12 = vadd.f32 %v2338_v24, %v592_v10  ;;  %v611_v13 = vadd.f32 %v594_v11, %v2353_v34  ;;  %647 = vrot.lane.b32.xlu0 %v624_v8, %s2262_s26  ;;  %649 = vrot.lane.b32.xlu1 %v625_v9, %s2262_s26 }
 0x23b   : > { %2052 = vmatpush3.msra.mxu0 %v801_v28 }
 0x23c   : > { %v626_v14 = vadd.f32 %v619_v58, %v610_v12  ;;  %v627_v15 = vadd.f32 %v619_v58, %v611_v13  ;;  %2053 = vmatprep.subr.mxu0 %v800_v29 }
 0x23d   : > { %v596_v16 = vpop.permute.xlu0 %595  ;;  %2054 = vmatpush3.msra.mxu0 %v800_v29 }
 0x23e   : > { %v612_v17 = vadd.f32 %v2349_v31, %v596_v16  ;;  %651 = vrot.lane.b32.xlu0 %v626_v14, %s2262_s26  ;;  %653 = vrot.lane.b32.xlu1 %v627_v15, %s2262_s26  ;;  %v2406_v31 = vpop.f32.mrf.mxu1 }
 0x23f   : > { %2055 = vmatprep.subr.mxu0 %v799_v30 }
 0x240   : > { %v628_v18 = vadd.f32 %v619_v58, %v612_v17  ;;  %2056 = vmatpush3.msra.mxu0 %v799_v30  ;;  %v2408_v32 = vpop.f32.mrf.mxu1 }
 0x242   : > { %655 = vrot.lane.b32.xlu0 %v628_v18, %s2262_s26  ;;  %v2410_v33 = vpop.f32.mrf.mxu1 }
 0x244   : > { %v2412_v34 = vpop.f32.mrf.mxu1 }
 0x246   : > { %v2414_v35 = vpop.f32.mrf.mxu1 }
 0x248   : > { %v2416_v36 = vpop.f32.mrf.mxu1 }
 0x24a   : > { %v2418_v37 = vpop.f32.mrf.mxu1 }
 0x24c   : > { %v2420_v38 = vpop.f32.mrf.mxu1 }
 0x2a4   : > { %v642_v19 = vpop.permute.xlu1 %641 }
 0x2a5   : > { %2037 = vmatprep.mubr.msk.f32.mxu1 %vm174_vm0, %v642_v19 }
 0x2a8   : > { %v644_v20 = vpop.permute.xlu0 %643  ;;  %v646_v21 = vpop.permute.xlu1 %645 }
 0x2a9   : > { %2038 = vmatmul.mubr.msk.f32.vlgmr.msra.gmra.mxu1 %vm174_vm0, %v644_v20 }
 0x2aa   : > { %2040 = vmatprep.mubr.msk.f32.mxu1 %vm174_vm0, %v646_v21 }
 0x2ac   : > { %v648_v22 = vpop.permute.xlu0 %647  ;;  %v650_v23 = vpop.permute.xlu1 %649 }
 0x2ad   : > { %2041 = vmatmul.mubr.msk.f32.gmra.mxu1 %vm174_vm0, %v648_v22 }
 0x2ae   : > { %2043 = vmatprep.mubr.msk.f32.mxu1 %vm174_vm0, %v650_v23 }
 0x2b0   : > { %v652_v24 = vpop.permute.xlu0 %651  ;;  %v654_v25 = vpop.permute.xlu1 %653 }
 0x2b1   : > { %2044 = vmatmul.mubr.msk.f32.gmra.mxu1 %vm174_vm0, %v652_v24 }
 0x2b2   : > { %2046 = vmatprep.mubr.msk.f32.mxu1 %vm174_vm0, %v654_v25 }
 0x2b4   : > { %v656_v26 = vpop.permute.xlu0 %655 }
 0x2b5   : > { %2047 = vmatmul.mubr.msk.f32.gmra.mxu1 %vm174_vm0, %v656_v26 }
 0x369   : > { %v2422_v40 = vpop.f32.mrf.mxu1 }
 0x36a   : > { %v784_v41 = vadd.f32 %v2422_v40, %v1815_v39 }
 0x36b   : > { %v2425_v42 = vpop.f32.mrf.mxu1 }
 0x36c   : > { %v783_v43 = vadd.f32 %v1815_v39, %v2425_v42 }
 0x36d   : > { %v2428_v44 = vpop.f32.mrf.mxu1 }
 0x36e   : > { %2188 = vtanh.f32 %v783_v43  ;;  %v786_v45 = vadd.f32 %v2428_v44, %v1815_v39 }
 0x36f   : > { %2190 = vtanh.f32 %v784_v41  ;;  %v2431_v46 = vpop.f32.mrf.mxu1 }
 0x370   : > { %v785_v47 = vadd.f32 %v1815_v39, %v2431_v46 }
 0x371   : > { %v2434_v48 = vpop.f32.mrf.mxu1 }
 0x372   : > { %2192 = vtanh.f32 %v785_v47  ;;  %v788_v49 = vadd.f32 %v2434_v48, %v1815_v39 }
 0x373   : > { %2194 = vtanh.f32 %v786_v45  ;;  %v2437_v50 = vpop.f32.mrf.mxu1 }
 0x374   : > { %v787_v51 = vadd.f32 %v1815_v39, %v2437_v50 }
 0x375   : > { %v2440_v52 = vpop.f32.mrf.mxu1 }
 0x376   : > { %2196 = vtanh.f32 %v787_v51  ;;  %v790_v53 = vadd.f32 %v2440_v52, %v1815_v39 }
 0x377   : > { %2198 = vtanh.f32 %v788_v49  ;;  %v2443_v54 = vpop.f32.mrf.mxu1 }
 0x378   : > { %v789_v55 = vadd.f32 %v1815_v39, %v2443_v54 }
 0x37a   : > { %2200 = vtanh.f32 %v789_v55 }
 0x37b   : > { %v2189_v56 = vpop.eup %2188  ;;  %2202 = vtanh.f32 %v790_v53 }
 0x37c   : > { %v2191_v57 = vpop.eup %2190  ;;  %2057 = vmatprep.mubr.msk.f32.mxu0 %vm174_vm0, %v2189_v56 }
 0x37d   : > { %2058 = vmatmul.mubr.msk.f32.vlgmr.msra.gmra.mxu0 %vm174_vm0, %v2191_v57 }
 0x37f   : > { %v2193_v58 = vpop.eup %2192 }
 0x380   : > { %v2195_v59 = vpop.eup %2194  ;;  %2060 = vmatprep.mubr.msk.f32.mxu0 %vm174_vm0, %v2193_v58 }
 0x381   : > { %2061 = vmatmul.mubr.msk.f32.gmra.mxu0 %vm174_vm0, %v2195_v59 }
 0x383   : > { %v2197_v60 = vpop.eup %2196 }
 0x384   : > { %v2199_v61 = vpop.eup %2198  ;;  %2063 = vmatprep.mubr.msk.f32.mxu0 %vm174_vm0, %v2197_v60 }
 0x385   : > { %2064 = vmatmul.mubr.msk.f32.gmra.mxu0 %vm174_vm0, %v2199_v61 }
 0x387   : > { %v2201_v62 = vpop.eup %2200 }
 0x388   : > { %v2203_v63 = vpop.eup %2202  ;;  %2066 = vmatprep.mubr.msk.f32.mxu0 %vm174_vm0, %v2201_v62 }
 0x389   : > { %2067 = vmatmul.mubr.msk.f32.gmra.mxu0 %vm174_vm0, %v2203_v63 }
 0x43d   : > { %v2059_v1 = vpop.f32.mrf.mxu0 }
 0x43e   : > { %v904_v2 = vadd.f32 %v2059_v1, %v1816_v0 }
 0x43f   : > { %v898_v3 = vpop.f32.mrf.mxu0 }
 0x440   : > { %v899_v4 = vadd.f32 %v1816_v0, %v898_v3  ;;  %v943_v5 = vsel %vm939_vm1, %v904_v2, 0.0 }
 0x441   : > { %944 = vadd.xlane.f32.xlu0 %v943_v5  ;;  %v2062_v6 = vpop.f32.mrf.mxu0 }
 0x442   : > { %v914_v7 = vadd.f32 %v2062_v6, %v1816_v0  ;;  %v940_v8 = vsel %vm939_vm1, %v899_v4, 0.0 }
 0x443   : > { %941 = vadd.xlane.f32.xlu1 %v940_v8  ;;  %v908_v9 = vpop.f32.mrf.mxu0 }
 0x444   : > { %v909_v10 = vadd.f32 %v1816_v0, %v908_v9  ;;  %v949_v13 = vsel %vm939_vm1, %v914_v7, 0.0 }
 0x445   : > { %v2065_v11 = vpop.f32.mrf.mxu0 }
 0x446   : > { %v924_v12 = vadd.f32 %v2065_v11, %v1816_v0  ;;  %v946_v14 = vsel %vm939_vm1, %v909_v10, 0.0 }
 0x447   : > { %950 = vadd.xlane.f32.xlu1 %v949_v13  ;;  %947 = vadd.xlane.f32.xlu0 %v946_v14  ;;  %v918_v15 = vpop.f32.mrf.mxu0 }
 0x448   : > { %v919_v16 = vadd.f32 %v1816_v0, %v918_v15  ;;  %v955_v19 = vsel %vm939_vm1, %v924_v12, 0.0 }
 0x449   : > { %v2068_v17 = vpop.f32.mrf.mxu0 }
 0x44a   : > { %v934_v18 = vadd.f32 %v2068_v17, %v1816_v0  ;;  %v952_v20 = vsel %vm939_vm1, %v919_v16, 0.0  ;;  %v1222_v17 = vld [vmem:[#allocation2 + $0xf8] sm:$0xff] }
 0x44b   : > { %956 = vadd.xlane.f32.xlu1 %v955_v19  ;;  %953 = vadd.xlane.f32.xlu0 %v952_v20  ;;  %v928_v21 = vpop.f32.mrf.mxu0  ;;  %v1078_v19 = vld [vmem:[#allocation2 + $0xe0] sm:$0xff]  ;;  %v1077_v20 = vld [vmem:[#allocation2 + $0xd8] sm:$0xff] }
 0x44c   : > { %v929_v22 = vadd.f32 %v1816_v0, %v928_v21  ;;  %v961_v23 = vsel %vm939_vm1, %v934_v18, 0.0  ;;  %2085 = vmatprep.subr.mxu0 %v1222_v17  ;;  %2069 = vmatprep.subr.mxu1 %v1078_v19  ;;  %v1844_v21 = vld [vmem:[#allocation2 + $0x100] ss:$0 sm:$0xff] }
 0x44d   : > { %2086 = vmatpush3.msra.mxu0 %v1222_v17  ;;  %2070 = vmatpush3.msra.mxu1 %v1078_v19 }
 0x44e   : > { %v958_v24 = vsel %vm939_vm1, %v929_v22, 0.0  ;;  %2071 = vmatprep.subr.mxu1 %v1077_v20 }
 0x44f   : > { %962 = vadd.xlane.f32.xlu1 %v961_v23  ;;  %959 = vadd.xlane.f32.xlu0 %v958_v24 }
 0x450   : > { %2072 = vmatpush3.msra.mxu1 %v1077_v20 }
 0x4ca   : > { %v945_v25 = vpop.xlane.xlu0 %944 }
 0x4cb   : > { %v966_v26 = vmul.f32 0.0625, %v945_v25 }
 0x4cc   : > { %v942_v27 = vpop.xlane.xlu1 %941 }
 0x4cd   : > { %v2462_v28 = vsub.f32 %v904_v2, %v966_v26  ;;  %v965_v29 = vmul.f32 0.0625, %v942_v27 }
 0x4cf   : > { %v2464_v30 = vsub.f32 %v899_v4, %v965_v29  ;;  %v982_v39 = vmul.f32 %v2462_v28, %v2462_v28 }
 0x4d0   : > { %v951_v41 = vpop.xlane.xlu1 %950  ;;  %v948_v43 = vpop.xlane.xlu0 %947 }
 0x4d1   : > { %v968_v45 = vmul.f32 0.0625, %v951_v41  ;;  %v967_v47 = vmul.f32 0.0625, %v948_v43  ;;  %v992_v49 = vsel %vm939_vm1, %v982_v39, 0.0  ;;  %v981_v51 = vmul.f32 %v2464_v30, %v2464_v30 }
 0x4d2   : > { %993 = vadd.xlane.f32.xlu1 %v992_v49 }
 0x4d3   : > { %v2471_v53 = vsub.f32 %v914_v7, %v968_v45  ;;  %v2473_v55 = vsub.f32 %v909_v10, %v967_v47  ;;  %v989_v56 = vsel %vm939_vm1, %v981_v51, 0.0 }
 0x4d4   : > { %v957_v57 = vpop.xlane.xlu1 %956  ;;  %v954_v58 = vpop.xlane.xlu0 %953  ;;  %990 = vadd.xlane.f32.xlu0 %v989_v56 }
 0x4d5   : > { %v970_v59 = vmul.f32 0.0625, %v957_v57  ;;  %v969_v60 = vmul.f32 0.0625, %v954_v58  ;;  %v984_v61 = vmul.f32 %v2471_v53, %v2471_v53  ;;  %v983_v62 = vmul.f32 %v2473_v55, %v2473_v55 }
 0x4d7   : > { %v2480_v63 = vsub.f32 %v924_v12, %v970_v59  ;;  %v2482_v0 = vsub.f32 %v919_v16, %v969_v60  ;;  %v998_v1 = vsel %vm939_vm1, %v984_v61, 0.0  ;;  %v995_v2 = vsel %vm939_vm1, %v983_v62, 0.0 }
 0x4d8   : > { %999 = vadd.xlane.f32.xlu1 %v998_v1  ;;  %v963_v3 = vpop.xlane.xlu1 %962  ;;  %996 = vadd.xlane.f32.xlu0 %v995_v2  ;;  %v960_v4 = vpop.xlane.xlu0 %959 }
 0x4d9   : > { %v972_v5 = vmul.f32 0.0625, %v963_v3  ;;  %v971_v6 = vmul.f32 0.0625, %v960_v4  ;;  %v986_v7 = vmul.f32 %v2480_v63, %v2480_v63  ;;  %v985_v8 = vmul.f32 %v2482_v0, %v2482_v0 }
 0x4db   : > { %v2490_v9 = vsub.f32 %v934_v18, %v972_v5  ;;  %v2492_v10 = vsub.f32 %v929_v22, %v971_v6  ;;  %v1004_v11 = vsel %vm939_vm1, %v986_v7, 0.0  ;;  %v1001_v12 = vsel %vm939_vm1, %v985_v8, 0.0  ;;  %v1221_v18 = vld [vmem:[#allocation2 + $0xf0] sm:$0xff]  ;;  %v1825_v5 = vld [vmem:[#allocation2 + $0xc8] ss:$0 sm:$0xff] }
 0x4dc   : > { %1005 = vadd.xlane.f32.xlu1 %v1004_v11  ;;  %1002 = vadd.xlane.f32.xlu0 %v1001_v12  ;;  %v1826_v11 = vld [vmem:[#allocation2 + $0xd0] ss:$0 sm:$0xff] }
 0x4dd   : > { %v988_v13 = vmul.f32 %v2490_v9, %v2490_v9  ;;  %v987_v14 = vmul.f32 %v2492_v10, %v2492_v10  ;;  %2087 = vmatprep.subr.mxu0 %v1221_v18 }
 0x4de   : > { %2088 = vmatpush3.msra.mxu0 %v1221_v18 }
 0x4df   : > { %v1010_v15 = vsel %vm939_vm1, %v988_v13, 0.0  ;;  %v1007_v16 = vsel %vm939_vm1, %v987_v14, 0.0 }
 0x4e0   : > { %1011 = vadd.xlane.f32.xlu1 %v1010_v15  ;;  %1008 = vadd.xlane.f32.xlu0 %v1007_v16 }
 0x4f1   : > { %1374 = vrot.lane.b32.xlu1 %v1844_v21, %s2261_s25 }
 0x55b   : > { %v994_v22 = vpop.xlane.xlu1 %993 }
 0x55c   : > { %v1014_v23 = vmul.f32 0.0625, %v994_v22 }
 0x55d   : > { %v991_v24 = vpop.xlane.xlu0 %990 }
 0x55e   : > { %v1022_v25 = vadd.f32 1e-05, %v1014_v23  ;;  %v1013_v26 = vmul.f32 0.0625, %v991_v24 }
 0x560   : > { %2204 = vrsqrt.f32 %v1022_v25  ;;  %v1021_v27 = vadd.f32 1e-05, %v1013_v26 }
 0x561   : > { %v1000_v29 = vpop.xlane.xlu1 %999  ;;  %v997_v39 = vpop.xlane.xlu0 %996 }
 0x562   : > { %2206 = vrsqrt.f32 %v1021_v27  ;;  %v1016_v41 = vmul.f32 0.0625, %v1000_v29  ;;  %v1015_v43 = vmul.f32 0.0625, %v997_v39 }
 0x564   : > { %v1024_v45 = vadd.f32 1e-05, %v1016_v41  ;;  %v1023_v47 = vadd.f32 1e-05, %v1015_v43 }
 0x565   : > { %v1006_v49 = vpop.xlane.xlu1 %1005  ;;  %v1003_v51 = vpop.xlane.xlu0 %1002 }
 0x566   : > { %2208 = vrsqrt.f32 %v1024_v45  ;;  %v1018_v56 = vmul.f32 0.0625, %v1006_v49  ;;  %v1017_v57 = vmul.f32 0.0625, %v1003_v51 }
 0x567   : > { %2210 = vrsqrt.f32 %v1023_v47 }
 0x568   : > { %v1026_v58 = vadd.f32 1e-05, %v1018_v56  ;;  %v1025_v59 = vadd.f32 1e-05, %v1017_v57 }
 0x569   : > { %v1012_v60 = vpop.xlane.xlu1 %1011  ;;  %v1009_v61 = vpop.xlane.xlu0 %1008 }
 0x56a   : > { %2212 = vrsqrt.f32 %v1026_v58  ;;  %v1020_v62 = vmul.f32 0.0625, %v1012_v60  ;;  %v1019_v1 = vmul.f32 0.0625, %v1009_v61  ;;  %v2527_v60 = vld [vmem:[#allocation2 + $0x48] ss:$0 sm:$0xff] }
 0x56b   : > { %2214 = vrsqrt.f32 %v1025_v59  ;;  %v2529_v61 = vld [vmem:[#allocation2 + $0xe8] ss:$0 sm:$0xff] }
 0x56c   : > { %v1028_v2 = vadd.f32 1e-05, %v1020_v62  ;;  %v1027_v3 = vadd.f32 1e-05, %v1019_v1 }
 0x56d   : > { %v2205_v4 = vpop.eup %2204 }
 0x56e   : > { %v1038_v6 = vmul.f32 %v2205_v4, %v2462_v28  ;;  %2216 = vrsqrt.f32 %v1028_v2  ;;  %v430_v2 = vadd.f32 %v2406_v31, %v2527_v60  ;;  %v440_v31 = vadd.f32 %v2410_v33, %v2527_v60 }
 0x56f   : > { %v2207_v7 = vpop.eup %2206  ;;  %2218 = vrsqrt.f32 %v1027_v3 }
 0x570   : > { %v1050_v8 = vmul.f32 %v1825_v5, %v1038_v6  ;;  %v1037_v12 = vmul.f32 %v2207_v7, %v2464_v30  ;;  %v425_v6 = vadd.f32 %v2527_v60, %v2408_v32  ;;  %v1388_v32 = vld [vmem:[#allocation2 + $0x120] sm:$0xff] }
 0x571   : > { %2101 = vmatprep.subr.mxu1 %v1388_v32 }
 0x572   : > { %v1049_v13 = vmul.f32 %v1825_v5, %v1037_v12  ;;  %v1062_v15 = vadd.f32 %v1826_v11, %v1050_v8 }
 0x573   : > { %v2209_v14 = vpop.eup %2208 }
 0x574   : > { %v2211_v16 = vpop.eup %2210  ;;  %v1061_v17 = vadd.f32 %v1826_v11, %v1049_v13  ;;  %v1040_v18 = vmul.f32 %v2209_v14, %v2471_v53  ;;  %v1070_v28 = vmax.f32 %v1062_v15, 0.0 }
 0x575   : > { %v1039_v19 = vmul.f32 %v2211_v16, %v2473_v55 }
 0x576   : > { %v1069_v20 = vmax.f32 %v1061_v17, 0.0  ;;  %v1052_v21 = vmul.f32 %v1825_v5, %v1040_v18  ;;  %v1387_v17 = vld [vmem:[#allocation2 + $0x118] sm:$0xff]  ;;  %v435_v18 = vadd.f32 %v2527_v60, %v2412_v34 }
 0x577   : > { %v2213_v22 = vpop.eup %2212  ;;  %v1051_v23 = vmul.f32 %v1825_v5, %v1039_v19 }
 0x578   : > { %v2215_v24 = vpop.eup %2214  ;;  %2073 = vmatprep.mubr.msk.f32.mxu1 %vm939_vm1, %v1069_v20  ;;  %2089 = vmatprep.mubr.msk.f32.mxu0 %vm939_vm1, %v1069_v20  ;;  %v1064_v30 = vadd.f32 %v1826_v11, %v1052_v21  ;;  %v1042_v25 = vmul.f32 %v2213_v22, %v2480_v63  ;;  %v1386_v22 = vld [vmem:[#allocation2 + $0x110] sm:$0xff] }
 0x579   : > { %2074 = vmatmul.mubr.msk.f32.vlgmr.msra.gmra.mxu1 %vm939_vm1, %v1070_v28  ;;  %2090 = vmatmul.mubr.msk.f32.vlgmr.msra.gmra.mxu0 %vm939_vm1, %v1070_v28  ;;  %v1063_v53 = vadd.f32 %v1826_v11, %v1051_v23  ;;  %v1041_v55 = vmul.f32 %v2215_v24, %v2482_v0  ;;  %v450_v28 = vadd.f32 %v2414_v35, %v2527_v60 }
 0x57a   : > { %v1072_v26 = vmax.f32 %v1064_v30, 0.0  ;;  %v1054_v27 = vmul.f32 %v1825_v5, %v1042_v25  ;;  %2102 = vmatpush3.msra.mxu1 %v1388_v32  ;;  %v1385_v25 = vld [vmem:[#allocation2 + $0x108] sm:$0xff] }
 0x57b   : > { %v2217_v29 = vpop.eup %2216  ;;  %v1071_v39 = vmax.f32 %v1063_v53, 0.0  ;;  %v1053_v41 = vmul.f32 %v1825_v5, %v1041_v55  ;;  %2103 = vmatprep.subr.mxu1 %v1387_v17  ;;  %v445_v53 = vadd.f32 %v2527_v60, %v2416_v36 }
 0x57c   : > { %v2219_v43 = vpop.eup %2218  ;;  %v1066_v45 = vadd.f32 %v1826_v11, %v1054_v27  ;;  %v1044_v47 = vmul.f32 %v2217_v29, %v2490_v9  ;;  %2104 = vmatpush3.msra.mxu1 %v1387_v17  ;;  %v460_v29 = vadd.f32 %v2418_v37, %v2527_v60  ;;  %v1547_v17 = vld [vmem:[#allocation2 + $0x130] sm:$0xff] }
 0x57d   : > { %2076 = vmatprep.mubr.msk.f32.mxu1 %vm939_vm1, %v1071_v39  ;;  %2092 = vmatprep.mubr.msk.f32.mxu0 %vm939_vm1, %v1071_v39  ;;  %v1065_v63 = vadd.f32 %v1826_v11, %v1053_v41  ;;  %v1043_v49 = vmul.f32 %v2219_v43, %v2492_v10 }
 0x57e   : > { %2077 = vmatmul.mubr.msk.f32.gmra.mxu1 %vm939_vm1, %v1072_v26  ;;  %2093 = vmatmul.mubr.msk.f32.gmra.mxu0 %vm939_vm1, %v1072_v26  ;;  %v1074_v0 = vmax.f32 %v1066_v45, 0.0  ;;  %v1056_v51 = vmul.f32 %v1825_v5, %v1044_v47  ;;  %v1375_v45 = vpop.permute.xlu1 %1374 }
 0x57f   : > { %v1073_v56 = vmax.f32 %v1065_v63, 0.0  ;;  %v1055_v57 = vmul.f32 %v1825_v5, %v1043_v49  ;;  %2105 = vmatprep.subr.mxu1 %v1386_v22 }
 0x580   : > { %v1068_v58 = vadd.f32 %v1826_v11, %v1056_v51  ;;  %2106 = vmatpush3.msra.mxu1 %v1386_v22 }
 0x581   : > { %2079 = vmatprep.mubr.msk.f32.mxu1 %vm939_vm1, %v1073_v56  ;;  %2095 = vmatprep.mubr.msk.f32.mxu0 %vm939_vm1, %v1073_v56  ;;  %v1067_v9 = vadd.f32 %v1826_v11, %v1055_v57 }
 0x582   : > { %2080 = vmatmul.mubr.msk.f32.gmra.mxu1 %vm939_vm1, %v1074_v0  ;;  %2096 = vmatmul.mubr.msk.f32.gmra.mxu0 %vm939_vm1, %v1074_v0  ;;  %v1076_v59 = vmax.f32 %v1068_v58, 0.0 }
 0x583   : > { %v1075_v10 = vmax.f32 %v1067_v9, 0.0  ;;  %2107 = vmatprep.subr.mxu1 %v1385_v25 }
 0x584   : > { %2108 = vmatpush3.msra.mxu1 %v1385_v25 }
 0x585   : > { %2082 = vmatprep.mubr.msk.f32.mxu1 %vm939_vm1, %v1075_v10  ;;  %2098 = vmatprep.mubr.msk.f32.mxu0 %vm939_vm1, %v1075_v10  ;;  %v1550_v10 = vld [vmem:[#allocation2 + $0x148] sm:$0xff] }
 0x586   : > { %2083 = vmatmul.mubr.msk.f32.gmra.mxu1 %vm939_vm1, %v1076_v59  ;;  %2099 = vmatmul.mubr.msk.f32.gmra.mxu0 %vm939_vm1, %v1076_v59 }
 0x587   : > { %2121 = vmatprep.subr.mxu0 %v1550_v10 }
 0x588   : > { %2122 = vmatpush3.msra.mxu0 %v1550_v10 }
 0x639   : > { %v2075_v62 = vpop.f32.mrf.mxu1  ;;  %v2091_v1 = vpop.f32.mrf.mxu0 }
 0x63a   : > { %v1180_v3 = vadd.f32 %v2075_v62, %v2529_v61  ;;  %1339 = vrot.lane.b32.xlu1 %v2091_v1, %s2261_s25  ;;  %v1549_v62 = vld [vmem:[#allocation2 + $0x140] sm:$0xff] }
 0x63b   : > { %v1174_v4 = vpop.f32.mrf.mxu1  ;;  %v1290_v5 = vpop.f32.mrf.mxu0  ;;  %2123 = vmatprep.subr.mxu0 %v1549_v62 }
 0x63c   : > { %v2537_v7 = vadd.f32 %v1180_v3, %v430_v2  ;;  %v1175_v8 = vadd.f32 %v2529_v61, %v1174_v4  ;;  %1337 = vrot.lane.b32.xlu0 %v1290_v5, %s2261_s25  ;;  %2124 = vmatpush3.msra.mxu0 %v1549_v62 }
 0x63e   : > { %v2541_v11 = vadd.f32 %v1175_v8, %v425_v6  ;;  %v2078_v12 = vpop.f32.mrf.mxu1  ;;  %v2094_v13 = vpop.f32.mrf.mxu0 }
 0x63f   : > { %v1190_v14 = vadd.f32 %v2078_v12, %v2529_v61  ;;  %1343 = vrot.lane.b32.xlu1 %v2094_v13, %s2261_s25 }
 0x640   : > { %v1184_v15 = vpop.f32.mrf.mxu1  ;;  %v1300_v16 = vpop.f32.mrf.mxu0 }
 0x641   : > { %v2549_v19 = vadd.f32 %v1190_v14, %v440_v31  ;;  %v1185_v20 = vadd.f32 %v2529_v61, %v1184_v15  ;;  %1341 = vrot.lane.b32.xlu0 %v1300_v16, %s2261_s25 }
 0x642   : > { %v2081_v21 = vpop.f32.mrf.mxu1  ;;  %v2097_v33 = vpop.f32.mrf.mxu0 }
 0x643   : > { %v2555_v23 = vadd.f32 %v1185_v20, %v435_v18  ;;  %v1200_v24 = vadd.f32 %v2081_v21, %v2529_v61  ;;  %1347 = vrot.lane.b32.xlu1 %v2097_v33, %s2261_s25  ;;  %v1845_v20 = vld [vmem:[#allocation2 + $0x128] ss:$0 sm:$0xff] }
 0x644   : > { %v1194_v34 = vpop.f32.mrf.mxu1  ;;  %v1310_v30 = vpop.f32.mrf.mxu0 }
 0x645   : > { %v2561_v55 = vadd.f32 %v1200_v24, %v450_v28  ;;  %v1195_v26 = vadd.f32 %v2529_v61, %v1194_v34  ;;  %1345 = vrot.lane.b32.xlu0 %v1310_v30, %s2261_s25 }
 0x646   : > { %v2084_v35 = vpop.f32.mrf.mxu1  ;;  %v2100_v27 = vpop.f32.mrf.mxu0 }
 0x647   : > { %v2567_v39 = vadd.f32 %v1195_v26, %v445_v53  ;;  %v1210_v41 = vadd.f32 %v2084_v35, %v2529_v61  ;;  %1351 = vrot.lane.b32.xlu1 %v2100_v27, %s2261_s25 }
 0x648   : > { %v1320_v36 = vpop.f32.mrf.mxu0  ;;  %v1204_v18 = vpop.f32.mrf.mxu1 }
 0x649   : > { %v2571_v43 = vadd.f32 %v1210_v41, %v460_v29  ;;  %1349 = vrot.lane.b32.xlu0 %v1320_v36, %s2261_s25 }
 0x6ac   : > { %v1340_v47 = vpop.permute.xlu1 %1339 }
 0x6ad   : > { %v1362_v63 = vadd.f32 %v2422_v40, %v1340_v47 }
 0x6ae   : > { %v1338_v49 = vpop.permute.xlu0 %1337 }
 0x6af   : > { %v1378_v0 = vadd.f32 %v1375_v45, %v1362_v63  ;;  %v1361_v37 = vadd.f32 %v1338_v49, %v2425_v42  ;;  %v1548_v42 = vld [vmem:[#allocation2 + $0x138] sm:$0xff] }
 0x6b0   : > { %2125 = vmatprep.subr.mxu0 %v1548_v42 }
 0x6b1   : > { %v1377_v51 = vadd.f32 %v1375_v45, %v1361_v37  ;;  %v1344_v56 = vpop.permute.xlu1 %1343  ;;  %1404 = vrot.lane.b32.xlu1 %v1378_v0, %s2262_s26  ;;  %2126 = vmatpush3.msra.mxu0 %v1548_v42 }
 0x6b2   : > { %v1364_v57 = vadd.f32 %v2428_v44, %v1344_v56  ;;  %2127 = vmatprep.subr.mxu0 %v1547_v17 }
 0x6b3   : > { %v1342_v58 = vpop.permute.xlu0 %1341  ;;  %1402 = vrot.lane.b32.xlu0 %v1377_v51, %s2262_s26  ;;  %2128 = vmatpush3.msra.mxu0 %v1547_v17 }
 0x6b4   : > { %v1380_v9 = vadd.f32 %v1375_v45, %v1364_v57  ;;  %v1363_v59 = vadd.f32 %v1342_v58, %v2431_v46  ;;  %v1854_v58 = vld [vmem:[#allocation2 + $0x150] ss:$0 sm:$0xff] }
 0x6b5   : > { %v1348_v1 = vpop.permute.xlu1 %1347 }
 0x6b6   : > { %v1379_v40 = vadd.f32 %v1375_v45, %v1363_v59  ;;  %v1366_v2 = vadd.f32 %v2434_v48, %v1348_v1  ;;  %1408 = vrot.lane.b32.xlu1 %v1380_v9, %s2262_s26 }
 0x6b7   : > { %v1346_v3 = vpop.permute.xlu0 %1345 }
 0x6b8   : > { %v1382_v44 = vadd.f32 %v1375_v45, %v1366_v2  ;;  %v1365_v4 = vadd.f32 %v1346_v3, %v2437_v50  ;;  %1406 = vrot.lane.b32.xlu0 %v1379_v40, %s2262_s26 }
 0x6b9   : > { %v1352_v46 = vpop.permute.xlu1 %1351 }
 0x6ba   : > { %v1381_v5 = vadd.f32 %v1375_v45, %v1365_v4  ;;  %v1368_v6 = vadd.f32 %v2440_v52, %v1352_v46  ;;  %1412 = vrot.lane.b32.xlu1 %v1382_v44, %s2262_s26 }
 0x6bb   : > { %v1350_v48 = vpop.permute.xlu0 %1349 }
 0x6bc   : > { %v1384_v8 = vadd.f32 %v1375_v45, %v1368_v6  ;;  %v1367_v12 = vadd.f32 %v1350_v48, %v2443_v54  ;;  %1410 = vrot.lane.b32.xlu0 %v1381_v5, %s2262_s26 }
 0x6be   : > { %v1383_v13 = vadd.f32 %v1375_v45, %v1367_v12  ;;  %1416 = vrot.lane.b32.xlu1 %v1384_v8, %s2262_s26 }
 0x6c0   : > { %1414 = vrot.lane.b32.xlu0 %v1383_v13, %s2262_s26 }
 0x723   : > { %v1405_v50 = vpop.permute.xlu1 %1404 }
 0x725   : > { %v1403_v31 = vpop.permute.xlu0 %1402 }
 0x726   : > { %2109 = vmatprep.mubr.msk.f32.mxu1 %vm174_vm0, %v1403_v31 }
 0x727   : > { %2110 = vmatmul.mubr.msk.f32.vlgmr.msra.gmra.mxu1 %vm174_vm0, %v1405_v50 }
 0x728   : > { %v1409_v52 = vpop.permute.xlu1 %1408 }
 0x72a   : > { %v1407_v14 = vpop.permute.xlu0 %1406 }
 0x72b   : > { %2112 = vmatprep.mubr.msk.f32.mxu1 %vm174_vm0, %v1407_v14 }
 0x72c   : > { %2113 = vmatmul.mubr.msk.f32.gmra.mxu1 %vm174_vm0, %v1409_v52  ;;  %v1413_v54 = vpop.permute.xlu1 %1412 }
 0x72e   : > { %v1411_v15 = vpop.permute.xlu0 %1410 }
 0x72f   : > { %2115 = vmatprep.mubr.msk.f32.mxu1 %vm174_vm0, %v1411_v15 }
 0x730   : > { %2116 = vmatmul.mubr.msk.f32.gmra.mxu1 %vm174_vm0, %v1413_v54  ;;  %v1417_v32 = vpop.permute.xlu1 %1416 }
 0x732   : > { %v1415_v16 = vpop.permute.xlu0 %1414 }
 0x733   : > { %2118 = vmatprep.mubr.msk.f32.mxu1 %vm174_vm0, %v1415_v16 }
 0x734   : > { %2119 = vmatmul.mubr.msk.f32.gmra.mxu1 %vm174_vm0, %v1417_v32 }
 0x7e7   : > { %v2111_v21 = vpop.f32.mrf.mxu1 }
 0x7e8   : > { %v1506_v33 = vadd.f32 %v2111_v21, %v1845_v20 }
 0x7e9   : > { %v1500_v22 = vpop.f32.mrf.mxu1 }
 0x7ea   : > { %v1501_v28 = vadd.f32 %v1845_v20, %v1500_v22  ;;  %v1540_v30 = vmax.f32 %v1506_v33, 0.0 }
 0x7ec   : > { %v1539_v24 = vmax.f32 %v1501_v28, 0.0  ;;  %v2114_v34 = vpop.f32.mrf.mxu1 }
 0x7ed   : > { %v1516_v25 = vadd.f32 %v2114_v34, %v1845_v20 }
 0x7ee   : > { %v1510_v53 = vpop.f32.mrf.mxu1  ;;  %2129 = vmatprep.mubr.msk.f32.mxu0 %vm174_vm0, %v1539_v24 }
 0x7ef   : > { %v1511_v26 = vadd.f32 %v1845_v20, %v1510_v53  ;;  %2130 = vmatmul.mubr.msk.f32.vlgmr.msra.gmra.mxu0 %vm174_vm0, %v1540_v30  ;;  %v1542_v29 = vmax.f32 %v1516_v25, 0.0 }
 0x7f0   : > { %v2117_v35 = vpop.f32.mrf.mxu1 }
 0x7f1   : > { %v1541_v27 = vmax.f32 %v1511_v26, 0.0  ;;  %v1526_v41 = vadd.f32 %v2117_v35, %v1845_v20 }
 0x7f2   : > { %v1520_v36 = vpop.f32.mrf.mxu1 }
 0x7f3   : > { %v1521_v45 = vadd.f32 %v1845_v20, %v1520_v36  ;;  %2132 = vmatprep.mubr.msk.f32.mxu0 %vm174_vm0, %v1541_v27  ;;  %v1544_v49 = vmax.f32 %v1526_v41, 0.0 }
 0x7f4   : > { %v2120_v47 = vpop.f32.mrf.mxu1  ;;  %2133 = vmatmul.mubr.msk.f32.gmra.mxu0 %vm174_vm0, %v1542_v29 }
 0x7f5   : > { %v1543_v63 = vmax.f32 %v1521_v45, 0.0  ;;  %v1536_v0 = vadd.f32 %v2120_v47, %v1845_v20 }
 0x7f6   : > { %v1530_v37 = vpop.f32.mrf.mxu1 }
 0x7f7   : > { %v1531_v51 = vadd.f32 %v1845_v20, %v1530_v37  ;;  %2135 = vmatprep.mubr.msk.f32.mxu0 %vm174_vm0, %v1543_v63  ;;  %v1546_v57 = vmax.f32 %v1536_v0, 0.0 }
 0x7f8   : > { %2136 = vmatmul.mubr.msk.f32.gmra.mxu0 %vm174_vm0, %v1544_v49 }
 0x7f9   : > { %v1545_v56 = vmax.f32 %v1531_v51, 0.0 }
 0x7fb   : > { %2138 = vmatprep.mubr.msk.f32.mxu0 %vm174_vm0, %v1545_v56 }
 0x7fc   : > { %2139 = vmatmul.mubr.msk.f32.gmra.mxu0 %vm174_vm0, %v1546_v57 }
 0x8af   : > { %v2131_v9 = vpop.f32.mrf.mxu0 }
 0x8b0   : > { %v1652_v59 = vadd.f32 %v2131_v9, %v1854_v58 }
 0x8b1   : > { %v1646_v10 = vpop.f32.mrf.mxu0 }
 0x8b2   : > { %v1686_v62 = vadd.f32 %v1652_v59, %v2537_v7  ;;  %v1647_v1 = vadd.f32 %v1854_v58, %v1646_v10 }
 0x8b4   : > { %1694 = vst.msk [vmem:[%s2611_s29 + $0x8] sm:$0xff] %vm174_vm0, %v1686_v62  ;;  %v1685_v40 = vadd.f32 %v1647_v1, %v2541_v11  ;;  %v2134_v2 = vpop.f32.mrf.mxu0  ;;  %v1205_v11 = vadd.f32 %v2529_v61, %v1204_v18 }
 0x8b5   : > { %v1662_v42 = vadd.f32 %v2134_v2, %v1854_v58 }
 0x8b6   : > { %1693 = vst.msk [vmem:[%s2611_s29] sm:$0xff] %vm174_vm0, %v1685_v40  ;;  %v1656_v3 = vpop.f32.mrf.mxu0 }
 0x8b7   : > { %v1688_v44 = vadd.f32 %v1662_v42, %v2549_v19  ;;  %v1657_v4 = vadd.f32 %v1854_v58, %v1656_v3  ;;  %v455_v19 = vadd.f32 %v2527_v60, %v2420_v38 }
 0x8b8   : > { %v2137_v46 = vpop.f32.mrf.mxu0 }
 0x8b9   : > { %1696 = vst.msk [vmem:[%s2611_s29 + $0x18] sm:$0xff] %vm174_vm0, %v1688_v44  ;;  %v1687_v7 = vadd.f32 %v1657_v4, %v2555_v23  ;;  %v1672_v5 = vadd.f32 %v2137_v46, %v1854_v58  ;;  %v1219_v31 = vadd.f32 %v1205_v11, %v455_v19 }
 0x8ba   : > { %v1666_v6 = vpop.f32.mrf.mxu0 }
 0x8bb   : > { %1695 = vst.msk [vmem:[%s2611_s29 + $0x10] sm:$0xff] %vm174_vm0, %v1687_v7  ;;  %v1690_v48 = vadd.f32 %v1672_v5, %v2561_v55  ;;  %v1667_v8 = vadd.f32 %v1854_v58, %v1666_v6 }
 0x8bc   : > { %v2140_v12 = vpop.f32.mrf.mxu0 }
 0x8bd   : > { %1698 = vst.msk [vmem:[%s2611_s29 + $0x28] sm:$0xff] %vm174_vm0, %v1690_v48  ;;  %v1689_v13 = vadd.f32 %v1667_v8, %v2567_v39  ;;  %v1682_v23 = vadd.f32 %v2140_v12, %v1854_v58 }
 0x8be   : > { %v1676_v50 = vpop.f32.mrf.mxu0 }
 0x8bf   : > { %1697 = vst.msk [vmem:[%s2611_s29 + $0x20] sm:$0xff] %vm174_vm0, %v1689_v13  ;;  %v1692_v61 = vadd.f32 %v1682_v23, %v2571_v43  ;;  %v1677_v52 = vadd.f32 %v1854_v58, %v1676_v50 }
 0x8c1   : > { %1700 = vst.msk [vmem:[%s2611_s29 + $0x38] sm:$0xff] %vm174_vm0, %v1692_v61  ;;  %v1691_v55 = vadd.f32 %v1677_v52, %v1219_v31 }
 0x8c3   : > { %1699 = vst.msk [vmem:[%s2611_s29 + $0x30] sm:$0xff] %vm174_vm0, %v1691_v55 }
 0x8c4 PF: > { %s13_s9 = sadd.s32 1, %s2256_s9  }
 0x8c5   : > { %p10_p1 = scmp.ge.s32.totalorder %s13_s9, 4  }
 0x8c7   :  { %12 = sbr.rel (!%p10_p1) target bundleno = 1 (0x1), region = 63 }
 0x8cc   :  { %1723 = vsyncpa [#allocation3], 1 }
 0x8cd   :  { %1725 = vsyncpa [#allocation3 + $0x1], 1 }

</bundles_post_ra>
